<compile_context>
chip_gen: v5e
topology: v5e:2x2
jax: 0.10.0
libtpu: 0.0.40
codegen_flags: <defaults>
</compile_context>

<pallas_src>
import functools

import jax
import jax.numpy as jnp
from jax.experimental import pallas as pl
from jax.experimental.pallas import tpu as pltpu


def _layernorm2d_kernel(x_ref, w_ref, b_ref, o_ref, *, eps, affine_dtype):
    # x_ref: (1, C, TILE_HW); w_ref/b_ref: (1, C, 1)
    x = x_ref[...].astype(jnp.float32)                       # (1, C, T)
    inv_c = 1.0 / x.shape[1]

    # One-pass statistics (f32 accumulation), channel reduce on the XLU.
    mu = jnp.sum(x, axis=1, keepdims=True) * inv_c           # (1, 1, T)
    ex2 = jnp.sum(x * x, axis=1, keepdims=True) * inv_c      # (1, 1, T)
    var = jnp.maximum(ex2 - mu * mu, 0.0)                    # clamp cancellation
    inv = jax.lax.rsqrt(var + eps)                           # EUP

    w = w_ref[...].astype(jnp.float32)                       # (1, C, 1)
    b = b_ref[...].astype(jnp.float32)
    scale = inv * w                                          # (1, C, T)
    shift = b - mu * scale                                   # (1, C, T)

    if jnp.dtype(affine_dtype) == jnp.dtype(jnp.float32):
        y = x * scale + shift
    else:
        # bf16-native VALU on v6e/v7x: fused output pass in the input dtype.
        y = (x_ref[...].astype(affine_dtype) * scale.astype(affine_dtype)
             + shift.astype(affine_dtype))
    o_ref[...] = y.astype(o_ref.dtype)


def _tpu_budgets():
    """Generation-aware block-byte budget, VMEM limit, cap and bf16-affine flag."""
    try:
        kind = jax.devices()[0].device_kind.lower()
    except Exception:  # pragma: no cover - defensive
        kind = ""
    if "v7" in kind:
        # v7x: 64 MiB VMEM per TensorCore -> cap blocks and the scoped limit.
        return dict(block=7 << 19, limit=40 << 20, cap=48 << 20, bf16_affine=True)
    if "v6" in kind:
        # v6e: 128 MiB VMEM, bf16-native VALU.
        return dict(block=8 << 20, limit=64 << 20, cap=100 << 20, bf16_affine=True)
    if "v5e" in kind or "v5 lite" in kind:
        # v5e: 128 MiB VMEM, no bf16 VALU -> push tile size, keep f32 compute.
        return dict(block=8 << 20, limit=64 << 20, cap=100 << 20, bf16_affine=False)
    # Unknown / other generations: conservative sizing, f32 compute.
    return dict(block=4 << 20, limit=48 << 20, cap=64 << 20, bf16_affine=False)


def _choose_tile_hw(hw, c, itemsize, target_block_bytes, n_batch, min_total_steps=8):
    """Largest lane tile (multiple of 128, or full HW) near the byte budget,
    then shrink so the grid has enough steps to pipeline / feed both v7x TCs."""
    bytes_per_lane = max(1, c * itemsize)
    lanes = (target_block_bytes // bytes_per_lane) // 128 * 128
    lanes = max(128, lanes)  # 128-lane floor (large C handled by bumping the VMEM limit)
    tile = hw if hw <= lanes else lanes

    # Prevent grid collapse: with only 1-2 grid steps the auto-pipeline has
    # nothing to overlap and a v7x TensorCore sits idle.
    if hw > 128:
        while n_batch * pl.cdiv(hw, tile) < min_total_steps and tile > 128:
            tile = max(128, (tile // 2) // 128 * 128)
            if tile == 128:
                break
    return tile


def layernorm2d(x, weight, bias, eps=1e-6):
    """x: (N, C, H, W); weight, bias: (C,). Returns (N, C, H, W)."""
    N, C, H, W = x.shape
    HW = H * W
    itemsize = jnp.dtype(x.dtype).itemsize
    budgets = _tpu_budgets()

    # Free contiguous views — no transpose, no pad, no extra HBM passes.
    x3 = x.reshape(N, C, HW)
    w3 = weight.reshape(1, C, 1)
    b3 = bias.reshape(1, C, 1)

    tile_hw = _choose_tile_hw(HW, C, itemsize, budgets["block"], N)
    grid = (N, pl.cdiv(HW, tile_hw))

    # bf16 affine/store only where the VALU is bf16-native and x is bf16.
    affine_dtype = (jnp.bfloat16
                    if (x.dtype == jnp.bfloat16 and budgets["bf16_affine"])
                    else jnp.float32)

    # Size the scoped-VMEM limit for the real block (2x in + 2x out buffers,
    # f32 upcast temporaries, weights, slack); clamp to the generation cap.
    block_bytes = C * tile_hw * itemsize
    f32_block = C * tile_hw * 4
    needed = 4 * block_bytes + 2 * f32_block + 2 * C * 4 + (1 << 20)
    vmem_limit = int(min(budgets["cap"], max(budgets["limit"], needed)))

    cost = pl.CostEstimate(
        flops=8 * N * C * HW,
        transcendentals=N * HW,
        bytes_accessed=2 * N * C * HW * itemsize + 2 * C * 4,
    )

    out = pl.pallas_call(
        functools.partial(_layernorm2d_kernel, eps=eps, affine_dtype=affine_dtype),
        out_shape=jax.ShapeDtypeStruct((N, C, HW), x.dtype),
        grid_spec=pltpu.PrefetchScalarGridSpec(
            num_scalar_prefetch=0,
            grid=grid,
            in_specs=[
                pl.BlockSpec((1, C, tile_hw), lambda n, t: (n, 0, t)),
                pl.BlockSpec((1, C, 1), lambda n, t: (0, 0, 0)),
                pl.BlockSpec((1, C, 1), lambda n, t: (0, 0, 0)),
            ],
            out_specs=pl.BlockSpec((1, C, tile_hw), lambda n, t: (n, 0, t)),
        ),
        compiler_params=pltpu.CompilerParams(
            dimension_semantics=("parallel", "parallel"),
            vmem_limit_bytes=vmem_limit,
        ),
        cost_estimate=cost,
    )(x3, w3, b3)

    return out.reshape(N, C, H, W)


def layernorm2d_reference(x, weight, bias, eps=1e-6):
    mu = jnp.mean(x, axis=1, keepdims=True)
    var = jnp.mean((x - mu) ** 2, axis=1, keepdims=True)
    y = (x - mu) / jnp.sqrt(var + eps)
    return weight.reshape(1, -1, 1, 1) * y + bias.reshape(1, -1, 1, 1)


if __name__ == "__main__":
    key = jax.random.PRNGKey(0)
    N, C, H, W = 2, 4, 16, 16

    kx, kw, kb = jax.random.split(key, 3)
    x = jax.random.normal(kx, (N, C, H, W), dtype=jnp.float32)
    # Module init: weight = ones(C), bias = zeros(C); perturb deterministically
    # so scale/shift are actually exercised.
    weight = jnp.ones((C,), jnp.float32) + 0.1 * jax.random.normal(kw, (C,))
    bias = jnp.zeros((C,), jnp.float32) + 0.1 * jax.random.normal(kb, (C,))

    out = layernorm2d(x, weight, bias, eps=1e-6)
    out = jax.block_until_ready(out)

    ref = layernorm2d_reference(x, weight, bias, eps=1e-6)
    assert out.shape == (N, C, H, W)
    assert jnp.allclose(out, ref, atol=1e-5, rtol=1e-5), "mismatch vs reference"

    print("KERNEL_OK")
</pallas_src>

<mosaic_0001>
module attributes {stable_mosaic.version = 11 : i64} {
  func.func @_layernorm2d_kernel(%arg0: i32, %arg1: i32, %arg2: memref<1x4x128xf32, #tpu.memory_space<vmem>>, %arg3: memref<1x4x1xf32, #tpu.memory_space<vmem>>, %arg4: memref<1x4x1xf32, #tpu.memory_space<vmem>>, %arg5: memref<1x4x128xf32, #tpu.memory_space<vmem>>) attributes {dimension_semantics = [#tpu.dimension_semantics<parallel>, #tpu.dimension_semantics<parallel>], iteration_bounds = array<i64: 2, 2>, scalar_prefetch = 0 : i64, scratch_operands = 0 : i64, tpu.core_type = #tpu.core_type<tc>, window_params = [{transform_indices = @transform_0, window_bounds = array<i64: 1, 4, 128>}, {pipeline_mode = #tpu.pipeline_mode<synchronous>, transform_indices = @transform_1, window_bounds = array<i64: 1, 4, 1>}, {pipeline_mode = #tpu.pipeline_mode<synchronous>, transform_indices = @transform_2, window_bounds = array<i64: 1, 4, 1>}, {transform_indices = @transform_3, window_bounds = array<i64: 1, 4, 128>}]} {
    %c0 = arith.constant 0 : index
    %c0_0 = arith.constant 0 : index
    %c0_1 = arith.constant 0 : index
    %0 = vector.load %arg2[%c0, %c0_0, %c0_1] : memref<1x4x128xf32, #tpu.memory_space<vmem>>, vector<1x4x128xf32>
    %cst = arith.constant dense<0.000000e+00> : vector<1x128xf32>
    %1 = vector.multi_reduction <add>, %0, %cst [1] : vector<1x4x128xf32> to vector<1x128xf32>
    %2 = vector.shape_cast %1 : vector<1x128xf32> to vector<1x1x128xf32>
    %cst_2 = arith.constant 2.500000e-01 : f32
    %3 = vector.broadcast %cst_2 : f32 to vector<1x1x128xf32>
    %4 = arith.mulf %2, %3 : vector<1x1x128xf32>
    %5 = arith.mulf %0, %0 : vector<1x4x128xf32>
    %cst_3 = arith.constant dense<0.000000e+00> : vector<1x128xf32>
    %6 = vector.multi_reduction <add>, %5, %cst_3 [1] : vector<1x4x128xf32> to vector<1x128xf32>
    %7 = vector.shape_cast %6 : vector<1x128xf32> to vector<1x1x128xf32>
    %cst_4 = arith.constant 2.500000e-01 : f32
    %8 = vector.broadcast %cst_4 : f32 to vector<1x1x128xf32>
    %9 = arith.mulf %7, %8 : vector<1x1x128xf32>
    %10 = arith.mulf %4, %4 : vector<1x1x128xf32>
    %11 = arith.subf %9, %10 : vector<1x1x128xf32>
    %cst_5 = arith.constant 0.000000e+00 : f32
    %12 = vector.broadcast %cst_5 : f32 to vector<1x1x128xf32>
    %13 = arith.maximumf %11, %12 : vector<1x1x128xf32>
    %cst_6 = arith.constant 9.99999997E-7 : f32
    %14 = vector.broadcast %cst_6 : f32 to vector<1x1x128xf32>
    %15 = arith.addf %13, %14 : vector<1x1x128xf32>
    %16 = math.rsqrt %15 : vector<1x1x128xf32>
    %c0_7 = arith.constant 0 : index
    %c0_8 = arith.constant 0 : index
    %c0_9 = arith.constant 0 : index
    %17 = vector.load %arg3[%c0_7, %c0_8, %c0_9] : memref<1x4x1xf32, #tpu.memory_space<vmem>>, vector<1x4x1xf32>
    %c0_10 = arith.constant 0 : index
    %c0_11 = arith.constant 0 : index
    %c0_12 = arith.constant 0 : index
    %18 = vector.load %arg4[%c0_10, %c0_11, %c0_12] : memref<1x4x1xf32, #tpu.memory_space<vmem>>, vector<1x4x1xf32>
    %19 = vector.broadcast %16 : vector<1x1x128xf32> to vector<1x4x128xf32>
    %20 = vector.broadcast %17 : vector<1x4x1xf32> to vector<1x4x128xf32>
    %21 = arith.mulf %19, %20 : vector<1x4x128xf32>
    %22 = vector.broadcast %4 : vector<1x1x128xf32> to vector<1x4x128xf32>
    %23 = arith.mulf %22, %21 : vector<1x4x128xf32>
    %24 = vector.broadcast %18 : vector<1x4x1xf32> to vector<1x4x128xf32>
    %25 = arith.subf %24, %23 : vector<1x4x128xf32>
    %26 = arith.mulf %0, %21 : vector<1x4x128xf32>
    %27 = arith.addf %26, %25 : vector<1x4x128xf32>
    %c0_13 = arith.constant 0 : index
    %c0_14 = arith.constant 0 : index
    %c0_15 = arith.constant 0 : index
    %28 = vector.load %arg5[%c0_13, %c0_14, %c0_15] : memref<1x4x128xf32, #tpu.memory_space<vmem>>, vector<1x4x128xf32>
    tpu.vector_store %arg5[%c0_13, %c0_14, %c0_15], %27 {strides = array<i32>} : memref<1x4x128xf32, #tpu.memory_space<vmem>>, vector<1x4x128xf32>,
    return
  }
  func.func @transform_0(%arg0: i32, %arg1: i32) -> (i32, i32, i32) {
    %c0_i32 = arith.constant 0 : i32
    %c0_i32_0 = arith.constant 0 : i32
    return %arg0, %c0_i32, %arg1 : i32, i32, i32
  }
  func.func @transform_1(%arg0: i32, %arg1: i32) -> (i32, i32, i32) {
    %c0_i32 = arith.constant 0 : i32
    %c0_i32_0 = arith.constant 0 : i32
    %c0_i32_1 = arith.constant 0 : i32
    %c0_i32_2 = arith.constant 0 : i32
    return %c0_i32, %c0_i32_0, %c0_i32_1 : i32, i32, i32
  }
  func.func @transform_2(%arg0: i32, %arg1: i32) -> (i32, i32, i32) {
    %c0_i32 = arith.constant 0 : i32
    %c0_i32_0 = arith.constant 0 : i32
    %c0_i32_1 = arith.constant 0 : i32
    %c0_i32_2 = arith.constant 0 : i32
    return %c0_i32, %c0_i32_0, %c0_i32_1 : i32, i32, i32
  }
  func.func @transform_3(%arg0: i32, %arg1: i32) -> (i32, i32, i32) {
    %c0_i32 = arith.constant 0 : i32
    %c0_i32_0 = arith.constant 0 : i32
    return %arg0, %c0_i32, %arg1 : i32, i32, i32
  }
}

</mosaic_0001>

<bundles_post_ra>
// kernel: tpu_custom_call.1
= control target key start
LH: loop header
LB: loop body
LE: loop exit
PB: predicated region body
PF: predicated region fallthrough
CT: control target
= control target key end

     0   :  { %8 = vsyncpa [#allocation3], 0  ;;  %s760_s0 = inlined_call_operand.hbm [shape: f32[2,4,256], index: 0, kind: input, shape index: {}]   ;;  %s761_s1 = inlined_call_operand.vmem [shape: f32[1,4,1], index: 1, kind: input, shape index: {}]   ;;  %s762_s2 = inlined_call_operand.vmem [shape: f32[1,4,1], index: 2, kind: input, shape index: {}]   ;;  %s763_s3 = inlined_call_operand.hbm [shape: f32[2,4,256], index: 3, kind: output, shape index: {}]  }
   0x1   :  { %10 = vsyncpa [#allocation3 + $0x1], 0 }
   0x2   :  { %11 = vsyncpa [#allocation4], 0 }
   0x3   :  { %13 = vsyncpa [#allocation4 + $0x1], 0  ;;  %s608_s12 = smov 0   ;;  %s610_s13 = smov 0  }
   0x4   :  { %s612_s14 = smov 0   ;;  %s614_s15 = smov 0  }
   0x5   :  { %s616_s16 = smov 0   ;;  %s618_s17 = smov 0  }
   0x6   :  { %s620_s18 = smov 0   ;;  %s622_s19 = smov 0  }
   0x7 LB: > { %s360_s20 = sadd.s32 4294967295, %s585_s19   ;;  %s361_s21 = sadd.s32 4294967294, %s585_s19   ;;  %s585_s19 = sphi %s622_s19, %s19_s19   ;;  %s581_s18 = sphi %s620_s18, %s777_s18   ;;  %s577_s17 = sphi %s618_s17, %s776_s17   ;;  %s573_s16 = sphi %s616_s16, %s775_s16   ;;  %s569_s15 = sphi %s614_s15, %s774_s15   ;;  %s565_s14 = sphi %s612_s14, %s773_s14   ;;  %s561_s13 = sphi %s610_s13, %s772_s13   ;;  %s557_s12 = sphi %s608_s12, %s771_s12  }
   0x8   : > { %s28_s22 = sadd.s32 1, %s577_s17  ;;  %s31_s23 = sadd.s32 1, %s581_s18 }
   0x9   : > { %p29_p0 = scmp.ge.s32.totalorder %s28_s22, 2  ;;  %s40_s24 = sadd.s32 1, %s565_s14 }
   0xa   : > { %p47_p1 = scmp.ne.s32.totalorder %s565_s14, %s561_s13  ;;  %p48_p2 = scmp.eq.s32.totalorder %s585_s19, 0 }
   0xb   : > { %s779_s22 = smov (%p29_p0, %s28_s22), 0  ;;  %s781_s23 = smov (!%p29_p0, %s31_s23), %s581_s18 }
   0xc   : > { %s36_s25 = ssub.s32 %s577_s17, %s779_s22  ;;  %p661_p3 = por %p48_p2, %p47_p1 }
   0xd   : > { %p33_p4 = scmp.ge.s32.totalorder %s781_s23, 2  ;;  %p53_p5 = scmp.ne.s32.totalorder %s561_s13, %s557_s12 }
   0xe   : > { %p54_p6 = scmp.eq.s32.totalorder %s360_s20, 0  ;;  %p121_p7 = scmp.eq.s32.totalorder %s360_s20, 3 }
   0xf   : > { %s783_s23 = smov (%p33_p4, %s781_s23), 0  ;;  %p127_p10 = scmp.eq.s32.totalorder %s361_s21, 3 }
  0x10   : > { %766 = sst [smem:[#allocation8_spill]] %s783_s23  ;;  %p669_p8 = por %p54_p6, %p53_p5 }
  0x11   : > { %p673_p9 = por %p121_p7, %p47_p1  ;;  %s35_s29 = ssub.s32 %s581_s18, %s783_s23 }
  0x12   : > { %s37_s30 = sor.u32 %s36_s25, %s35_s29  ;;  %p679_p12 = por %p127_p10, %p53_p5 }
  0x13   : > { %p38_p11 = scmp.eq.s32.totalorder %s37_s30, 0  ;;  %p387_p13 = scmp.lt.s32.totalorder %s585_s19, 4 }
  0x14   : > { %s153_s5 = sand.u32 1, %s565_s14   ;;  %s365_s8 = sshll.u32 %s581_s18, 1 }
  0x15   : > { %s686_s6 = scalar_select %p38_p11, %s565_s14, %s40_s24  }
  0x16   : > { %s364_s7 = sshll.u32 %s153_s5, 2  ;;  %s161_s9 = sadd.s32 %s577_s17, %s365_s8 }
  0x17   : > { %s157_s10 = scalar_lea.vmem [#allocation2], %s364_s7  ;;  %s366_s20 = sshll.u32 %s161_s9, 2 }
  0x18   : > { %s167_s11 = sshll.u32 %s157_s10, 4  ;;  %s163_s29 = scalar_lea.hbm %s760_s0, %s366_s20  ;;  %s168_s11 = int_to_ptr.vmem [resolvable:$true] %s167_s11 }
  0x19   : > { %p380_p0 = pnand %p387_p13, %p661_p3  ;;  %s165_s30 = sshll.u32 %s163_s29, 4  ;;  %s166_s30 = int_to_ptr.hbm [resolvable:$true] %s165_s30 }
  0x1a   : > { %p367_p1 = scmp.ge.s32.totalorder %s585_s19, 1  ;;  %s154_s23 = scalar_lea.sflag [#allocation3], %s153_s5 }
  0x1b   : > { %382 = dma.hbm_to_vmem [thread:$0]  (!%p380_p0), %s166_s30, 64, %s168_s11, %s154_s23  }
  0x1c   : > { %p172_p2 = scmp.lt.s32.totalorder %s585_s19, 5 }
  0x1e   : > { %p173_p4 = pnand %p367_p1, %p172_p2 }
  0x1f   : > { %s698_s24 = sand.u32 (!%p173_p4), 1, %s561_s13  }
  0x20   : > { %176 = sbr.rel (%p173_p4) target bundleno = 170 (0xaa), region = 32  ;;  %s368_s7 = sshll.u32 (!%p173_p4), %s698_s24, 2 }
  0x21   : > { %s179_s8 = scalar_lea.sflag (!%p173_p4), [#allocation3], %s698_s24  ;;  %s182_s26 = scalar_lea.vmem (!%p173_p4), [#allocation2], %s368_s7 }
  0x25   : > { %548 = dma.done.wait (%p669_p8), %s179_s8, 64  }
  0x26   : > { %550 = vsyncadd (%p669_p8), %s179_s8, 4294967232  ;;  %v587_v0 = vmov 0   ;;  %v239_v1 = vld [vmem:[%s761_s1] sm:$0xf]  ;;  %vm207_vm0 = vcmask 1043456   ;;  %s371_s27 = sshll.u32 %s573_s16, 1 }
  0x27   : > { %454 = vset.pattern.permute.xlu0 %v587_v0  ;;  %v240_v2 = vld [vmem:[%s762_s2] sm:$0xf]  ;;  %s268_s11 = sadd.s32 %s569_s15, %s371_s27  ;;  %s205_s30 = scalar_lea.vmem [#allocation5], %s368_s7 }
  0x28   : > { %243 = vperm.xlu0 %454, %v239_v1   ;;  %v206_v3 = vld [vmem:[%s182_s26] sm:$0xf]  ;;  %s372_s20 = sshll.u32 %s268_s11, 2  ;;  %s272_s8 = sshll.u32 %s205_s30, 4  ;;  %s273_s8 = int_to_ptr.vmem [resolvable:$true] %s272_s8 }
  0x29   : > { %v208_v4 = vsel %vm207_vm0, %v206_v3, 0.0  ;;  %v216_v5 = vmul.f32 %v206_v3, %v206_v3  ;;  %s270_s29 = scalar_lea.hbm %s763_s3, %s372_s20  ;;  %s258_s15 = scalar_lea.sflag [#allocation4], %s698_s24 }
  0x2a   : > { %v209_v6 = vrot.slane %v208_v4, 4  ;;  %s274_s26 = sshll.u32 %s270_s29, 4  ;;  %s507_s7 = scalar_lea.hbm %s763_s3, 16  ;;  %s275_s26 = int_to_ptr.hbm [resolvable:$true] %s274_s26 }
  0x2b   : > { %v217_v7 = vsel %vm207_vm0, %v216_v5, 0.0  ;;  %s501_s16 = sshra.s32 %s275_s26, 4  ;;  %s502_s16 = int_to_ptr.hbm [resolvable:$true] %s501_s16 }
  0x2c   : > { %v210_v8 = vadd.f32 %v209_v6, %v208_v4  ;;  %v218_v9 = vrot.slane %v217_v7, 4  ;;  %s503_s23 = scalar_lea.hbm %s502_s16, 4  ;;  %p508_p7 = scmp.lt.s32.totalorder %s502_s16, %s763_s3 }
  0x2d   : > { %p504_p3 = scmp.ne.s32.totalorder %s502_s16, %s503_s23  ;;  %p509_p8 = scmp.lt.s32.totalorder %s507_s7, %s503_s23 }
  0x2e   : > { %v211_v10 = vrot.slane %v210_v8, 2  ;;  %v219_v11 = vadd.f32 %v218_v9, %v217_v7 }
  0x2f   : > { %p505_p5 = pnand %p504_p3, %p673_p9  ;;  %p510_p10 = por %p509_p8, %p508_p7 }
  0x30   : > { %250 = vperm.xlu0 %454, %v240_v2   ;;  %v212_v12 = vadd.f32 %v211_v10, %v210_v8  ;;  %v220_v13 = vrot.slane %v219_v11, 2 }
  0x31   : > { %p506_p6 = pneg %p505_p5 }
  0x32   : > { %v213_v14 = vrot.slane %v212_v12, 1  ;;  %v221_v15 = vadd.f32 %v220_v13, %v219_v11 }
  0x33   : > { %p511_p11 = pnand %p510_p10, %p506_p6 }
  0x34   : > { %v214_v16 = vadd.f32 %v213_v14, %v212_v12  ;;  %v222_v17 = vrot.slane %v221_v15, 1 }
  0x36   : > { %v215_v18 = vmul.f32 0.25, %v214_v16  ;;  %v223_v19 = vadd.f32 %v222_v17, %v221_v15 }
  0x38   : > { %v224_v20 = vmul.f32 0.25, %v223_v19  ;;  %v225_v21 = vmul.f32 %v215_v18, %v215_v18 }
  0x3a   : > { %v226_v22 = vsub.f32 %v224_v20, %v225_v21 }
  0x3c   : > { %v227_v23 = vmax.f32 %v226_v22, 0.0 }
  0x3e   : > { %v228_v24 = vadd.f32 1e-06, %v227_v23 }
  0x40   : > { %455 = vrsqrt.f32 %v228_v24  ;;  %vm235_vm1 = vweird.f32 %v228_v24 }
  0x46   : > { %v456_v25 = vpop.eup %455 }
  0x47   : > { %v230_v26 = vmul.f32 %v456_v25, %v228_v24  ;;  %vm236_vm2 = vweird.f32 %v456_v25 }
  0x48   : > { %vm237_vm3 = vmor %vm235_vm1, %vm236_vm2 }
  0x49   : > { %v231_v27 = vmul.f32 %v456_v25, %v230_v26 }
  0x4b   : > { %v232_v28 = vmul.f32 0.5, %v231_v27 }
  0x4d   : > { %v233_v29 = vsub.f32 1.5, %v232_v28 }
  0x4f   : > { %v234_v30 = vmul.f32 %v456_v25, %v233_v29 }
  0x51   : > { %v238_v32 = vsel %vm237_vm3, %v456_v25, %v234_v30 }
  0x9a   : > { %v244_v31 = vpop.permute.xlu0 %243 }
  0x9b   : > { %v246_v33 = vmul.f32 %v244_v31, %v238_v32 }
  0x9d   : > { %v247_v34 = vmul.f32 %v246_v33, %v215_v18  ;;  %v254_v36 = vmul.f32 %v246_v33, %v206_v3 }
  0xa2   : > { %v251_v35 = vpop.permute.xlu0 %250 }
  0xa3   : > { %v253_v37 = vsub.f32 %v251_v35, %v247_v34 }
  0xa5   : > { %v255_v38 = vadd.f32 %v254_v36, %v253_v37 }
  0xa7   : > { %256 = vst [vmem:[%s205_s30] sm:$0xf] %v255_v38 }
  0xa8   : > { %514 = shalt.err (!%p511_p11)
}
  0xa9   : > { %377 = dma.vmem_to_hbm [thread:$0]  (%p673_p9), %s273_s8, 64, %s275_s26, %s258_s15  }
  0xaa PF: > { %p388_p13 = scmp.ge.s32.totalorder %s585_s19, 2  ;;  %s286_s24 = sand.u32 1, %s557_s12  }
  0xab   : > { %s287_s11 = scalar_lea.sflag [#allocation4], %s286_s24 }
  0xac   : > { %p384_p0 = pnand %p388_p13, %p679_p12 }
  0xae   : > { %p385_p1 = pneg %p384_p0 }
  0xb0   : > { %552 = dma.done.wait (%p385_p1), %s287_s11, 64  }
  0xb1   : > { %554 = vsyncadd (%p385_p1), %s287_s11, 4294967232  ;;  %s19_s19 = sadd.s32 1, %s585_s19   ;;  %s770_s28 = sld [smem:[#allocation8_spill]] }
  0xb2   : > { %p16_p2 = scmp.ge.s32.totalorder %s19_s19, 6   ;;  %s771_s12 = smov %s561_s13 }
  0xb3   : > { %s772_s13 = smov %s565_s14  ;;  %s773_s14 = smov %s686_s6 }
  0xb4   : > { %s774_s15 = smov %s577_s17  ;;  %s775_s16 = smov %s581_s18 }
  0xb5   : > { %s776_s17 = smov %s779_s22  ;;  %18 = sbr.rel (!%p16_p2) target bundleno = 7 (0x7), region = 77 }
  0xb7   : > { %s777_s18 = smov %s770_s28 }
  0xba   :  { %293 = vsyncpa [#allocation3], 1 }
  0xbb   :  { %295 = vsyncpa [#allocation3 + $0x1], 1 }
  0xbc   :  { %296 = vsyncpa [#allocation4], 1 }
  0xbd   :  { %298 = vsyncpa [#allocation4 + $0x1], 1 }

</bundles_post_ra>
